<compile_context>
chip_gen: v7x
topology: tpu7x:2x2x1
jax: 0.10.0
libtpu: 0.0.40
codegen_flags: <defaults>
</compile_context>

<pallas_src>
import functools
import math

import jax
import jax.numpy as jnp
from jax.experimental import pallas as pl
from jax.experimental.pallas import tpu as pltpu


# ---------------------------------------------------------------------------
# Kernel
# ---------------------------------------------------------------------------

def _mlp_kernel(x_ref, w1_ref, b1_ref, w2_ref, b2_ref, o_ref, h_ref, acc_ref,
                *, approximate_gelu):
    """Grid = (i rows, j out tiles, k hidden tiles).

    i : parallel   (independent row tiles; megacore-shardable)
    j : arbitrary  (sequential; j == 0 fills the hidden-activation cache)
    k : arbitrary  (reduction axis of the second matmul)
    """
    j = pl.program_id(1)
    k = pl.program_id(2)

    @pl.when(k == 0)
    def _():
        acc_ref[...] = jnp.zeros_like(acc_ref)

    @pl.when(j == 0)
    def _():
        # hidden tile: h = gelu(x @ W1[:, k] + b1[k])  (fp32 math, cached)
        h = jnp.dot(x_ref[...], w1_ref[...], preferred_element_type=jnp.float32)
        h = h + b1_ref[...].astype(jnp.float32)
        if approximate_gelu:
            # tanh approximation (EUP path; useful on v5e's weak VPU). Opt-in.
            c = jnp.float32(0.7978845608028654)   # sqrt(2/pi)
            h = 0.5 * h * (1.0 + jnp.tanh(c * (h + 0.044715 * h * h * h)))
        else:
            # exact erf GELU, matching torch.nn.GELU() default.
            h = 0.5 * h * (1.0 + jax.lax.erf(h * jnp.float32(0.7071067811865476)))
        h_ref[k] = h.astype(h_ref.dtype)

    # Partial second matmul into the fp32 accumulator (re-uses cached h).
    acc_ref[...] += jnp.dot(h_ref[k], w2_ref[...],
                            preferred_element_type=jnp.float32)

    @pl.when(k == pl.num_programs(2) - 1)
    def _():
        # dropout p = 0.0 is the identity; add b2 exactly once at finalize.
        o_ref[...] = (acc_ref[...] + b2_ref[...].astype(jnp.float32)
                      ).astype(o_ref.dtype)


# ---------------------------------------------------------------------------
# Tiling helpers
# ---------------------------------------------------------------------------

def _round_up(n, m):
    return ((n + m - 1) // m) * m


def _pick_tile(dim, target, granule):
    """Pick a tile <= target and the (possibly padded) dim it divides.

    Prefers an exact divisor of `dim` that is a multiple of `granule`
    (-> no padding); falls back to padding `dim` up to a multiple of target.
    """
    if dim <= target:
        return dim, dim                 # full-dim block: always legal
    target = max(granule, (target // granule) * granule)
    t = target
    while t >= granule:
        if dim % t == 0:
            return t, dim               # exact divisor, no padding needed
        t -= granule
    return target, _round_up(dim, target)


def _device_defaults():
    """(block_rows, block_hidden, block_out, vmem_limit_bytes) per TPU gen."""
    kind = ""
    try:
        kind = jax.devices()[0].device_kind.lower()
    except Exception:
        pass
    if "v5 lite" in kind or "v5e" in kind or "v5litepod" in kind:
        # 128 MiB VMEM, 128x128 MXU, weak VPU: smaller hidden/out tiles.
        return 256, 256, 256, 96 * 1024 * 1024
    if "v6" in kind or "trillium" in kind:
        # 128 MiB VMEM, fast HBM: bigger row tiles cut weight re-streaming.
        return 512, 512, 512, 96 * 1024 * 1024
    if "v7" in kind:
        # 64 MiB VMEM: smaller hidden tile + tighter scoped-VMEM limit.
        return 256, 256, 512, 56 * 1024 * 1024
    # Unknown generation: conservative.
    return 256, 512, 512, 48 * 1024 * 1024


# ---------------------------------------------------------------------------
# Wrapper
# ---------------------------------------------------------------------------

def make_mlp(w1, b1, w2, b2, *,
             block_rows=None, block_hidden=None, block_out=None,
             compute_dtype=jnp.bfloat16, approximate_gelu=False,
             vmem_limit_bytes=None,
             h_cache_budget_bytes=16 * 1024 * 1024):
    """Pad / cast the weights ONCE and return `forward(x) -> y`.

    compute_dtype=bf16 by default (f32 MXU accumulation is always kept);
    pass compute_dtype=jnp.float32 (or None) for strict-accuracy math.
    """
    in_features, hidden = w1.shape
    out_features = w2.shape[1]
    assert w1.shape == (in_features, hidden)
    assert b1.shape == (hidden,)
    assert w2.shape == (hidden, out_features)
    assert b2.shape == (out_features,)

    d_rows, d_hid, d_out, d_vmem = _device_defaults()
    block_rows = d_rows if block_rows is None else block_rows
    block_hidden = d_hid if block_hidden is None else block_hidden
    block_out = d_out if block_out is None else block_out
    vmem_limit_bytes = d_vmem if vmem_limit_bytes is None else vmem_limit_bytes

    if compute_dtype is not None:
        w1 = w1.astype(compute_dtype)
        w2 = w2.astype(compute_dtype)
    cdtype = w1.dtype
    itemsize = jnp.dtype(cdtype).itemsize
    sub = max(8, 32 // max(1, min(4, itemsize)))   # sublane granule per dtype

    th, hidden_p = _pick_tile(hidden, block_hidden, 128)
    tn, out_p = _pick_tile(out_features, block_out, 128)

    # --- pad weights ONCE (init time), padding contributes exactly zero ---
    if hidden_p != hidden:
        w1 = jnp.pad(w1, ((0, 0), (0, hidden_p - hidden)))
        b1 = jnp.pad(b1, ((0, hidden_p - hidden),))
        w2 = jnp.pad(w2, ((0, hidden_p - hidden), (0, 0)))
    if out_p != out_features:
        w2 = jnp.pad(w2, ((0, 0), (0, out_p - out_features)))
        b2 = jnp.pad(b2, ((0, out_p - out_features),))
    b1_2d = b1.reshape(1, hidden_p)
    b2_2d = b2.reshape(1, out_p)

    num_k = hidden_p // th
    num_j = out_p // tn
    k_last = num_k - 1

    # Cap the row tile so the hidden-activation VMEM cache stays within budget.
    cap = max(sub, (h_cache_budget_bytes // max(1, hidden_p * itemsize))
              // sub * sub)
    block_rows_eff = max(sub, min(block_rows, cap))

    # W1 / b1 are consumed only at j == 0; freeze their block index for j > 0
    # so the pipeline skips the redundant HBM re-fetch (W1 streamed once / i).
    def w1_idx(i, j, k):
        return (0, jnp.where(j == 0, k, k_last))

    kernel = functools.partial(_mlp_kernel, approximate_gelu=approximate_gelu)

    def forward(x):
        assert x.shape[-1] == in_features
        out_dtype = x.dtype
        lead = x.shape[:-1]
        rows = math.prod(lead) if lead else 1
        x2d = x.reshape(rows, in_features)
        if compute_dtype is not None:
            x2d = x2d.astype(cdtype)

        tm, rows_p = _pick_tile(rows, block_rows_eff, sub)
        # Keep >= 2 "parallel" grid steps when possible (v7x: 2 TCs/chip).
        if rows_p // tm == 1 and num_j == 1 and rows_p >= 2 * sub:
            tm = _round_up((rows_p + 1) // 2, sub)
            rows_p = 2 * tm
        if rows_p != rows:
            x2d = jnp.pad(x2d, ((0, rows_p - rows), (0, 0)))

        grid = (rows_p // tm, num_j, num_k)

        flops = 2 * rows_p * (in_features * hidden_p + hidden_p * out_p)
        bytes_accessed = (
            x2d.size * x2d.dtype.itemsize
            + w1.size * w1.dtype.itemsize
            + w2.size * w2.dtype.itemsize
            + b1_2d.size * b1_2d.dtype.itemsize
            + b2_2d.size * b2_2d.dtype.itemsize
            + rows_p * out_p * jnp.dtype(out_dtype).itemsize)

        out2d = pl.pallas_call(
            kernel,
            out_shape=jax.ShapeDtypeStruct((rows_p, out_p), out_dtype),
            grid_spec=pltpu.PrefetchScalarGridSpec(
                num_scalar_prefetch=0,
                grid=grid,
                in_specs=[
                    pl.BlockSpec((tm, in_features), lambda i, j, k: (i, 0)),
                    pl.BlockSpec((in_features, th), w1_idx),
                    pl.BlockSpec((1, th), w1_idx),
                    pl.BlockSpec((th, tn), lambda i, j, k: (k, j)),
                    pl.BlockSpec((1, tn), lambda i, j, k: (0, j)),
                ],
                out_specs=pl.BlockSpec((tm, tn), lambda i, j, k: (i, j)),
                scratch_shapes=[
                    pltpu.VMEM((num_k, tm, th), cdtype),   # cached gelu(fc1)
                    pltpu.VMEM((tm, tn), jnp.float32),     # fc2 accumulator
                ],
            ),
            compiler_params=pltpu.CompilerParams(
                dimension_semantics=("parallel", "arbitrary", "arbitrary"),
                vmem_limit_bytes=vmem_limit_bytes,
            ),
            cost_estimate=pl.CostEstimate(
                flops=flops,
                transcendentals=rows_p * hidden_p,
                bytes_accessed=bytes_accessed),
        )(x2d, w1, b1_2d, w2, b2_2d)

        out2d = out2d[:rows, :out_features]
        return out2d.reshape(*lead, out_features)

    return forward


def mlp_pallas(x, w1, b1, w2, b2, **kwargs):
    """One-shot convenience wrapper. For repeated calls prefer make_mlp(...)
    at init time so weight padding / casting happens exactly once."""
    return make_mlp(w1, b1, w2, b2, **kwargs)(x)


# ---------------------------------------------------------------------------
# Reference / init helpers
# ---------------------------------------------------------------------------

def init_mlp_params(key, in_features, hidden_features, out_features,
                    dtype=jnp.float32):
    """Deterministic init mimicking nn.Linear's uniform(-1/sqrt(fan_in), +)."""
    k1, k2, k3, k4 = jax.random.split(key, 4)
    lim1 = 1.0 / math.sqrt(in_features)
    lim2 = 1.0 / math.sqrt(hidden_features)
    w1 = jax.random.uniform(k1, (in_features, hidden_features), dtype, -lim1, lim1)
    b1 = jax.random.uniform(k2, (hidden_features,), dtype, -lim1, lim1)
    w2 = jax.random.uniform(k3, (hidden_features, out_features), dtype, -lim2, lim2)
    b2 = jax.random.uniform(k4, (out_features,), dtype, -lim2, lim2)
    return w1, b1, w2, b2


def mlp_reference(x, w1, b1, w2, b2):
    h = x @ w1 + b1
    h = 0.5 * h * (1.0 + jax.lax.erf(h / jnp.sqrt(2.0)))
    return h @ w2 + b2


if __name__ == "__main__":
    key = jax.random.PRNGKey(0)
    kx, kp, kx2, kp2, kx3, kp3 = jax.random.split(key, 6)

    # --- test 1: small shapes, strict f32 path, single hidden/out tile ---
    batch, seq = 2, 8
    in_f, hid_f, out_f = 32, 64, 32
    x = jax.random.normal(kx, (batch, seq, in_f), jnp.float32)
    w1, b1, w2, b2 = init_mlp_params(kp, in_f, hid_f, out_f)

    out = jax.block_until_ready(
        mlp_pallas(x, w1, b1, w2, b2, compute_dtype=jnp.float32))
    ref = mlp_reference(x, w1, b1, w2, b2)
    assert out.shape == (batch, seq, out_f)
    assert jnp.allclose(out, ref, atol=1e-5, rtol=1e-5), "mismatch (f32 path)"

    # --- test 2: multi-tile hidden reduction + non-trivial row tiling (f32) ---
    b2_, s2_ = 2, 200                         # rows = 400
    in2, hid2, out2 = 32, 384, 64             # hidden tiled 3x (th=128)
    x2 = jax.random.normal(kx2, (b2_, s2_, in2), jnp.float32)
    p2 = init_mlp_params(kp2, in2, hid2, out2)
    out_b = jax.block_until_ready(
        mlp_pallas(x2, *p2, block_rows=256, block_hidden=128, block_out=512,
                   compute_dtype=jnp.float32))
    ref_b = mlp_reference(x2, *p2)
    assert out_b.shape == (b2_, s2_, out2)
    assert jnp.allclose(out_b, ref_b, atol=1e-4, rtol=1e-4), "mismatch (tiled k)"

    # --- test 3: multi-tile OUT axis -> exercises the H-cache reuse (j > 0) ---
    in3, hid3, out3 = 32, 256, 384            # num_j = 3, num_k = 2
    x3 = jax.random.normal(kx3, (4, 16, in3), jnp.float32)
    p3 = init_mlp_params(kp3, in3, hid3, out3)
    mlp3 = make_mlp(*p3, block_rows=256, block_hidden=128, block_out=128,
                    compute_dtype=jnp.float32)
    out_c = jax.block_until_ready(mlp3(x3))
    ref_c = mlp_reference(x3, *p3)
    assert out_c.shape == (4, 16, out3)
    assert jnp.allclose(out_c, ref_c, atol=1e-4, rtol=1e-4), "mismatch (tiled j)"

    # --- test 4: default bf16 compute path (f32 accumulation), loose tol ---
    out_bf16 = jax.block_until_ready(mlp_pallas(x, w1, b1, w2, b2))
    assert jnp.allclose(out_bf16, ref, atol=5e-2, rtol=5e-2), "mismatch (bf16)"

    print("KERNEL_OK")
</pallas_src>

<mosaic_0001>
module attributes {stable_mosaic.version = 11 : i64} {
  func.func @_mlp_kernel(%arg0: i32, %arg1: i32, %arg2: i32, %arg3: memref<8x32xf32, #tpu.memory_space<vmem>>, %arg4: memref<32x64xf32, #tpu.memory_space<vmem>>, %arg5: memref<1x64xf32, #tpu.memory_space<vmem>>, %arg6: memref<64x32xf32, #tpu.memory_space<vmem>>, %arg7: memref<1x32xf32, #tpu.memory_space<vmem>>, %arg8: memref<8x32xf32, #tpu.memory_space<vmem>>, %arg9: memref<1x8x64xf32, #tpu.memory_space<vmem>>, %arg10: memref<8x32xf32, #tpu.memory_space<vmem>>) attributes {dimension_semantics = [#tpu.dimension_semantics<parallel>, #tpu.dimension_semantics<arbitrary>, #tpu.dimension_semantics<arbitrary>], iteration_bounds = array<i64: 2, 1, 1>, scalar_prefetch = 0 : i64, scratch_operands = 2 : i64, tpu.core_type = #tpu.core_type<tc>, window_params = [{transform_indices = @transform_0, window_bounds = array<i64: 8, 32>}, {transform_indices = @transform_1, window_bounds = array<i64: 32, 64>}, {transform_indices = @transform_2, window_bounds = array<i64: 1, 64>}, {transform_indices = @transform_3, window_bounds = array<i64: 64, 32>}, {transform_indices = @transform_4, window_bounds = array<i64: 1, 32>}, {transform_indices = @transform_5, window_bounds = array<i64: 8, 32>}]} {
    %c0_i32 = arith.constant 0 : i32
    %0 = arith.cmpi eq, %arg2, %c0_i32 : i32
    %1 = arith.extui %0 : i1 to i32
    %c0_i32_0 = arith.constant 0 : i32
    %2 = arith.cmpi ne, %1, %c0_i32_0 : i32
    scf.if %2 {
      %cst_12 = arith.constant 0.000000e+00 : f32
      %17 = vector.broadcast %cst_12 : f32 to vector<8x32xf32>
      %c0_13 = arith.constant 0 : index
      %c0_14 = arith.constant 0 : index
      %18 = vector.load %arg10[%c0_13, %c0_14] : memref<8x32xf32, #tpu.memory_space<vmem>>, vector<8x32xf32>
      tpu.vector_store %arg10[%c0_13, %c0_14], %17 {strides = array<i32>} : memref<8x32xf32, #tpu.memory_space<vmem>>, vector<8x32xf32>,
    } else {
    }
    %c0_i32_1 = arith.constant 0 : i32
    %3 = arith.cmpi eq, %arg1, %c0_i32_1 : i32
    %4 = arith.extui %3 : i1 to i32
    %c0_i32_2 = arith.constant 0 : i32
    %5 = arith.cmpi ne, %4, %c0_i32_2 : i32
    scf.if %5 {
      %c0_12 = arith.constant 0 : index
      %c0_13 = arith.constant 0 : index
      %17 = vector.load %arg3[%c0_12, %c0_13] : memref<8x32xf32, #tpu.memory_space<vmem>>, vector<8x32xf32>
      %c0_14 = arith.constant 0 : index
      %c0_15 = arith.constant 0 : index
      %18 = vector.load %arg4[%c0_14, %c0_15] : memref<32x64xf32, #tpu.memory_space<vmem>>, vector<32x64xf32>
      %cst_16 = arith.constant dense<0.000000e+00> : vector<8x64xf32>
      %19 = tpu.matmul %17, %18, %cst_16 {dimension_numbers = #tpu.dot_dimension_numbers<[1], [0], [0], [1], [0, 0, 1, 1], [], []>} : vector<8x32xf32>, vector<32x64xf32>, vector<8x64xf32> -> vector<8x64xf32>
      %c0_17 = arith.constant 0 : index
      %c0_18 = arith.constant 0 : index
      %20 = vector.load %arg5[%c0_17, %c0_18] : memref<1x64xf32, #tpu.memory_space<vmem>>, vector<1x64xf32>
      %21 = vector.broadcast %20 : vector<1x64xf32> to vector<8x64xf32>
      %22 = arith.addf %19, %21 : vector<8x64xf32>
      %cst_19 = arith.constant 5.000000e-01 : f32
      %23 = vector.broadcast %cst_19 : f32 to vector<8x64xf32>
      %24 = arith.mulf %23, %22 : vector<8x64xf32>
      %cst_20 = arith.constant 0.707106769 : f32
      %25 = vector.broadcast %cst_20 : f32 to vector<8x64xf32>
      %26 = arith.mulf %22, %25 : vector<8x64xf32>
      %27 = math.erf %26 : vector<8x64xf32>
      %cst_21 = arith.constant 1.000000e+00 : f32
      %28 = vector.broadcast %cst_21 : f32 to vector<8x64xf32>
      %29 = arith.addf %28, %27 : vector<8x64xf32>
      %30 = arith.mulf %24, %29 : vector<8x64xf32>
      %31 = arith.index_cast %arg2 : i32 to index
      %c0_22 = arith.constant 0 : index
      %c0_23 = arith.constant 0 : index
      %32 = vector.load %arg9[%31, %c0_22, %c0_23] : memref<1x8x64xf32, #tpu.memory_space<vmem>>, vector<1x8x64xf32>
      %33 = vector.shape_cast %32 : vector<1x8x64xf32> to vector<8x64xf32>
      %34 = vector.shape_cast %30 : vector<8x64xf32> to vector<1x8x64xf32>
      tpu.vector_store %arg9[%31, %c0_22, %c0_23], %34 {strides = array<i32>} : memref<1x8x64xf32, #tpu.memory_space<vmem>>, vector<1x8x64xf32>,
    } else {
    }
    %c0 = arith.constant 0 : index
    %c0_3 = arith.constant 0 : index
    %6 = vector.load %arg10[%c0, %c0_3] : memref<8x32xf32, #tpu.memory_space<vmem>>, vector<8x32xf32>
    %7 = arith.index_cast %arg2 : i32 to index
    %c0_4 = arith.constant 0 : index
    %c0_5 = arith.constant 0 : index
    %8 = vector.load %arg9[%7, %c0_4, %c0_5] : memref<1x8x64xf32, #tpu.memory_space<vmem>>, vector<1x8x64xf32>
    %9 = vector.shape_cast %8 : vector<1x8x64xf32> to vector<8x64xf32>
    %c0_6 = arith.constant 0 : index
    %c0_7 = arith.constant 0 : index
    %10 = vector.load %arg6[%c0_6, %c0_7] : memref<64x32xf32, #tpu.memory_space<vmem>>, vector<64x32xf32>
    %cst = arith.constant dense<0.000000e+00> : vector<8x32xf32>
    %11 = tpu.matmul %9, %10, %cst {dimension_numbers = #tpu.dot_dimension_numbers<[1], [0], [0], [1], [0, 0, 1, 1], [], []>} : vector<8x64xf32>, vector<64x32xf32>, vector<8x32xf32> -> vector<8x32xf32>
    %12 = arith.addf %6, %11 : vector<8x32xf32>
    %c0_8 = arith.constant 0 : index
    %c0_9 = arith.constant 0 : index
    %13 = vector.load %arg10[%c0_8, %c0_9] : memref<8x32xf32, #tpu.memory_space<vmem>>, vector<8x32xf32>
    tpu.vector_store %arg10[%c0_8, %c0_9], %12 {strides = array<i32>} : memref<8x32xf32, #tpu.memory_space<vmem>>, vector<8x32xf32>,
    %c0_i32_10 = arith.constant 0 : i32
    %14 = arith.cmpi eq, %arg2, %c0_i32_10 : i32
    %15 = arith.extui %14 : i1 to i32
    %c0_i32_11 = arith.constant 0 : i32
    %16 = arith.cmpi ne, %15, %c0_i32_11 : i32
    scf.if %16 {
      %c0_12 = arith.constant 0 : index
      %c0_13 = arith.constant 0 : index
      %17 = vector.load %arg10[%c0_12, %c0_13] : memref<8x32xf32, #tpu.memory_space<vmem>>, vector<8x32xf32>
      %c0_14 = arith.constant 0 : index
      %c0_15 = arith.constant 0 : index
      %18 = vector.load %arg7[%c0_14, %c0_15] : memref<1x32xf32, #tpu.memory_space<vmem>>, vector<1x32xf32>
      %19 = vector.broadcast %18 : vector<1x32xf32> to vector<8x32xf32>
      %20 = arith.addf %17, %19 : vector<8x32xf32>
      %c0_16 = arith.constant 0 : index
      %c0_17 = arith.constant 0 : index
      %21 = vector.load %arg8[%c0_16, %c0_17] : memref<8x32xf32, #tpu.memory_space<vmem>>, vector<8x32xf32>
      tpu.vector_store %arg8[%c0_16, %c0_17], %20 {strides = array<i32>} : memref<8x32xf32, #tpu.memory_space<vmem>>, vector<8x32xf32>,
    } else {
    }
    return
  }
  func.func @transform_0(%arg0: i32, %arg1: i32, %arg2: i32) -> (i32, i32) {
    %c0_i32 = arith.constant 0 : i32
    %c0_i32_0 = arith.constant 0 : i32
    return %arg0, %c0_i32 : i32, i32
  }
  func.func @transform_1(%arg0: i32, %arg1: i32, %arg2: i32) -> (i32, i32) {
    %c0_i32 = arith.constant 0 : i32
    %0 = arith.cmpi eq, %arg1, %c0_i32 : i32
    %c0_i32_0 = arith.constant 0 : i32
    %1 = arith.select %0, %arg2, %c0_i32_0 : i32
    %c0_i32_1 = arith.constant 0 : i32
    %c0_i32_2 = arith.constant 0 : i32
    return %c0_i32_1, %1 : i32, i32
  }
  func.func @transform_2(%arg0: i32, %arg1: i32, %arg2: i32) -> (i32, i32) {
    %c0_i32 = arith.constant 0 : i32
    %0 = arith.cmpi eq, %arg1, %c0_i32 : i32
    %c0_i32_0 = arith.constant 0 : i32
    %1 = arith.select %0, %arg2, %c0_i32_0 : i32
    %c0_i32_1 = arith.constant 0 : i32
    %c0_i32_2 = arith.constant 0 : i32
    return %c0_i32_1, %1 : i32, i32
  }
  func.func @transform_3(%arg0: i32, %arg1: i32, %arg2: i32) -> (i32, i32) {
    %c0_i32 = arith.constant 0 : i32
    return %arg2, %arg1 : i32, i32
  }
  func.func @transform_4(%arg0: i32, %arg1: i32, %arg2: i32) -> (i32, i32) {
    %c0_i32 = arith.constant 0 : i32
    %c0_i32_0 = arith.constant 0 : i32
    return %c0_i32, %arg1 : i32, i32
  }
  func.func @transform_5(%arg0: i32, %arg1: i32, %arg2: i32) -> (i32, i32) {
    %c0_i32 = arith.constant 0 : i32
    return %arg0, %arg1 : i32, i32
  }
}

</mosaic_0001>

<bundles_post_ra>
// kernel: tpu_custom_call.1
= control target key start
LH: loop header
LB: loop body
LE: loop exit
PB: predicated region body
PF: predicated region fallthrough
CT: control target
= control target key end

     0   :  { %10 = vsyncpa [#allocation5], 0  ;;  %s1114_s0 = inlined_call_operand.vmem [shape: f32[16,32], index: 0, kind: input, shape index: {}]   ;;  %s1115_s1 = inlined_call_operand.vmem [shape: f32[32,64], index: 1, kind: input, shape index: {}]   ;;  %s1116_s2 = inlined_call_operand.vmem [shape: f32[1,64], index: 2, kind: input, shape index: {}]   ;;  %s1117_s3 = inlined_call_operand.vmem [shape: f32[64,32], index: 3, kind: input, shape index: {}]   ;;  %s1118_s4 = inlined_call_operand.vmem [shape: f32[1,32], index: 4, kind: input, shape index: {}]   ;;  %s1119_s5 = inlined_call_operand.hbm [shape: f32[16,32], index: 5, kind: output, shape index: {}]  }
   0x1   :  { %12 = vsyncpa [#allocation5 + $0x1], 0  ;;  %s956_s18 = smov 0   ;;  %s958_s19 = smov 0  }
   0x2   :  { %s960_s20 = smov 0   ;;  %s962_s21 = smov 0  }
   0x3   :  { %s964_s22 = smov 0   ;;  %s966_s23 = smov 0  }
   0x4 LB: > { %s701_s24 = sadd.s32 4294967295, %s920_s23   ;;  %s702_s25 = sadd.s32 4294967294, %s920_s23   ;;  %s920_s23 = sphi %s966_s23, %s18_s23   ;;  %s916_s22 = sphi %s964_s22, %s1126_s22   ;;  %s912_s21 = sphi %s962_s21, %s1125_s21   ;;  %s908_s20 = sphi %s960_s20, %s1124_s20   ;;  %s904_s19 = sphi %s958_s19, %s1123_s19   ;;  %s900_s18 = sphi %s956_s18, %s1122_s18  }
   0x5   : > { %s37_s26 = sadd.s32 1, %s916_s22  ;;  %s186_s27 = sadd.s32 1, %s908_s20 }
   0x6   : > { %p39_p0 = scmp.ge.s32.totalorder %s37_s26, 2  ;;  %p196_p1 = scmp.ne.s32.totalorder %s908_s20, %s904_s19 }
   0x7   : > { %p197_p2 = scmp.eq.s32.totalorder %s701_s24, 1  ;;  %p202_p3 = scmp.ne.s32.totalorder %s904_s19, %s900_s18 }
   0x8   : > { %s1128_s26 = smov (%p39_p0, %s37_s26), 0  ;;  %p203_p5 = scmp.eq.s32.totalorder %s702_s25, 1 }
   0x9   : > { %p996_p4 = por %p197_p2, %p196_p1  ;;  %s181_s29 = ssub.s32 %s916_s22, %s1128_s26 }
   0xa   : > { %p709_p6 = scmp.ge.s32.totalorder %s920_s23, 1  ;;  %p184_p7 = scmp.eq.s32.totalorder %s181_s29, 0 }
   0xb   : > { %p1003_p8 = por %p203_p5, %p202_p3  ;;  %p267_p9 = scmp.lt.s32.totalorder %s920_s23, 3 }
   0xc   : > { %s1009_s6 = scalar_select %p184_p7, %s908_s20, %s186_s27  }
   0xd   : > { %p268_p10 = pnand %p709_p6, %p267_p9 }
   0xe   : > { %v358_v0 = vld [vmem:[%s1115_s1] sm:$0xff] (!%p268_p10)  ;;  %v359_v1 = vld [vmem:[%s1115_s1 + $0x8] sm:$0xff] (!%p268_p10)  ;;  %v360_v2 = vld [vmem:[%s1115_s1 + $0x10] sm:$0xff] (!%p268_p10)  ;;  %v922_v3 = vmov (!%p268_p10), 0.0|0.0   ;;  %vm923_vm0 = vmmov (!%p268_p10), 0   ;;  %v924_v6 = vmov (!%p268_p10), 0.0  }
   0xf   : > { %271 = sbr.rel (%p268_p10) target bundleno = 504 (0x1f8), region = 40  ;;  %764 = vmatprep.subr.bf16.mxu0 (!%p268_p10), %v922_v3  ;;  %v765_v4 = vpack.c.bf16 (!%p268_p10), %v359_v1, %v358_v0  ;;  %v361_v5 = vld [vmem:[%s1115_s1 + $0x18] sm:$0xff] (!%p268_p10)  ;;  %742 = vmatprep.mubr.msk.f32.mxu0 (!%p268_p10), %vm923_vm0, %v924_v6  ;;  %p316_p11 = scmp.lt.s32.totalorder (!%p268_p10), %s912_s21, 1  ;;  %vm351_vm1 = vcmask (!%p268_p10), 261120   ;;  %v456_v9 = vld [vmem:[%s1117_s3] sm:$0xff] (!%p268_p10)  ;;  %v457_v10 = vld [vmem:[%s1117_s3 + $0x8] sm:$0xff] (!%p268_p10) }
  0x10   : > { %352 = vst.msk [vmem:[#allocation3] sm:$0xff] (!%p268_p10), %vm351_vm1, %v924_v6  ;;  %770 = vmatprep.subr.bf16.mxu1 (!%p268_p10), %v922_v3  ;;  %761 = vmatprep.mubr.msk.f32.mxu1 (!%p268_p10), %vm923_vm0, %v924_v6  ;;  %v768_v7 = vpack.c.bf16 (!%p268_p10), %v361_v5, %v360_v2  ;;  %v771_v11 = vpack.c.bf16 (!%p268_p10), %v457_v10, %v456_v9  ;;  %v458_v12 = vld [vmem:[%s1117_s3 + $0x10] sm:$0xff] (!%p268_p10)  ;;  %v459_v13 = vld [vmem:[%s1117_s3 + $0x18] sm:$0xff] (!%p268_p10)  ;;  %v460_v15 = vld [vmem:[%s1117_s3 + $0x20] sm:$0xff] (!%p268_p10)  ;;  %vm450_vm2 = vcmask (!%p268_p10), 523264   ;;  %s313_s8 = sand.u32 (!%p268_p10), 1, %s904_s19  }
  0x11   : > { %766 = vmatpush3.bf16.msra.mxu0 (!%p268_p10), %v765_v4  ;;  %v774_v14 = vpack.c.bf16 (!%p268_p10), %v459_v13, %v458_v12  ;;  %v461_v16 = vld [vmem:[%s1117_s3 + $0x28] sm:$0xff] (!%p268_p10)  ;;  %v462_v17 = vld [vmem:[%s1117_s3 + $0x30] sm:$0xff] (!%p268_p10)  ;;  %v463_v19 = vld [vmem:[%s1117_s3 + $0x38] sm:$0xff] (!%p268_p10)  ;;  %s710_s9 = sshll.u32 (!%p268_p10), %s313_s8, 3  ;;  %s717_s12 = sshll.u32 (!%p268_p10), %s912_s21, 7 }
  0x12   : > { %767 = vmatprep.subr.bf16.mxu0 (!%p268_p10), %v922_v3  ;;  %772 = vmatpush3.bf16.msra.mxu1 (!%p268_p10), %v771_v11  ;;  %v777_v18 = vpack.c.bf16 (!%p268_p10), %v461_v16, %v460_v15  ;;  %v780_v20 = vpack.c.bf16 (!%p268_p10), %v463_v19, %v462_v17  ;;  %v712_v21 = vld [vmem:[%s1116_s2] ss:$0 sm:$0xff] (!%p268_p10)  ;;  %s315_s13 = scalar_lea.vmem (!%p268_p10), [#allocation4], %s710_s9  ;;  %s1066_s17 = scalar_lea.hbm (!%p268_p10), %s1119_s5, %s717_s12 }
  0x13   : > { %773 = vmatprep.subr.bf16.mxu1 (!%p268_p10), %v922_v3  ;;  %v715_v35 = vld [vmem:[%s1118_s4] ss:$0 sm:$0xff] (!%p268_p10)  ;;  %s569_s14 = sshll.u32 (!%p268_p10), %s315_s13, 4  ;;  %s555_s24 = scalar_lea.sflag (!%p268_p10), [#allocation5], %s313_s8  ;;  %s1068_s14 = int_to_ptr.vmem [resolvable:$true] %s569_s14 }
  0x15   : > { %769 = vmatpush3.bf16.msra.mxu0 (!%p268_p10), %v768_v7 }
  0x16   : > { %s317_s15 = scalar_select %p316_p11, %s912_s21, 1  ;;  %775 = vmatpush3.bf16.msra.mxu1 %v774_v14 }
  0x17   : > { %776 = vmatprep.subr.bf16.mxu1 %v922_v3  ;;  %v452_v31 = vld [vmem:[#allocation3] sm:$0xff]  ;;  %s925_s21 = smov [#allocation4]  }
  0x18   : > { %s711_s16 = sshll.u32 %s317_s15, 3  ;;  %s846_s27 = sshll.u32 %s925_s21, 4  ;;  %s847_s27 = int_to_ptr.vmem [resolvable:$false] %s846_s27 }
  0x19   : > { %s319_s25 = scalar_lea.vmem %s1114_s0, %s711_s16  ;;  %s848_s29 = scalar_lea.vmem %s847_s27, 256 }
  0x1a   : > { %v357_v8 = vld [vmem:[%s319_s25] sm:$0xff]  ;;  %778 = vmatpush3.bf16.msra.mxu1 %v777_v18  ;;  %s842_s25 = scalar_lea.vmem %s1068_s14, 128  ;;  %p849_p1 = scmp.lt.s32.totalorder %s1068_s14, %s847_s27 }
  0x1b   : > { %743 = vmatmul.mubr.msk.f32.vlgmr.msra.gmra.mrb[0].mxu0 %vm351_vm1, %v357_v8  ;;  %779 = vmatprep.subr.bf16.mxu1 %v922_v3  ;;  %p843_p12 = scmp.ne.s32.totalorder %s1068_s14, %s842_s25  ;;  %p850_p2 = scmp.lt.s32.totalorder %s848_s29, %s842_s25 }
  0x1d   : > { %p844_p13 = pnand %p843_p12, %p996_p4  ;;  %p851_p3 = por %p850_p2, %p849_p1 }
  0x1e   : > { %781 = vmatpush3.bf16.msra.mxu1 %v780_v20 }
  0x1f   : > { %p845_p0 = pneg %p844_p13 }
  0x21   : > { %p852_p5 = pnand %p851_p3, %p845_p0 }
  0xee   : > { %v439_v22 = vpop.f32.mrb[0].mxu0 }
  0xef   : > { %v440_v23 = vadd.f32 %v712_v21, %v439_v22  ;;  %v744_v24 = vpop.f32.mrb[1].mxu0 }
  0xf1   : > { %v444_v25 = vmul.f32 0.70710677, %v440_v23  ;;  %v443_v27 = vmul.f32 0.5, %v440_v23 }
  0xf3   : > { %840 = verf.f32 %v444_v25 }
  0xfd   : > { %v841_v26 = vpop.eup %840 }
  0xfe   : > { %v446_v28 = vadd.f32 1.0, %v841_v26 }
 0x100   : > { %v447_v29 = vmul.f32 %v446_v28, %v443_v27 }
 0x102   : > { %451 = vst.msk [vmem:[#allocation2] sm:$0xff] %vm450_vm2, %v447_v29 }
 0x109   : > { %v455_v30 = vld [vmem:[#allocation2] sm:$0xff] }
 0x10a   : > { %762 = vmatmul.mubr.msk.f32.vlgmr.msra.gmra.mrb[0].mxu1 %vm450_vm2, %v455_v30 }
 0x1dd   : > { %v534_v32 = vpop.f32.mrb[0].mxu1 }
 0x1de   : > { %v538_v33 = vadd.f32 %v534_v32, %v452_v31  ;;  %v763_v34 = vpop.f32.mrb[1].mxu1 }
 0x1e0   : > { %540 = vst.msk [vmem:[#allocation3] sm:$0xff] %vm351_vm1, %v538_v33 }
 0x1e7   : > { %v544_v36 = vld [vmem:[#allocation3] sm:$0xff] }
 0x1e8   : > { %v552_v37 = vadd.f32 %v715_v35, %v544_v36 }
 0x1ea   : > { %553 = vst.msk [vmem:[%s315_s13] sm:$0xff] %vm351_vm1, %v552_v37 }
 0x1eb   : > { %855 = shalt.err (!%p852_p5)
}
 0x1ec   : > { %s856_s7 = scalar_lea.hbm %s1066_s17, 128  ;;  %s860_s10 = scalar_lea.hbm %s1119_s5, 256 }
 0x1ed   : > { %p857_p6 = scmp.ne.s32.totalorder %s1066_s17, %s856_s7  ;;  %p861_p10 = scmp.lt.u32.totalorder %s1066_s17, %s1119_s5 }
 0x1ee   : > { %p862_p11 = scmp.lt.u32.totalorder %s860_s10, %s856_s7  ;;  %p864_p13 = scmp.lt.u32.totalorder %s856_s7, %s1066_s17 }
 0x1ef   : > { %p858_p7 = pnand %p857_p6, %p996_p4 }
 0x1f0   : > { %p863_p12 = por %p862_p11, %p861_p10 }
 0x1f1   : > { %p859_p9 = pneg %p858_p7 }
 0x1f2   : > { %p865_p0 = por %p864_p13, %p863_p12 }
 0x1f4   : > { %p866_p1 = pnand %p865_p0, %p859_p9 }
 0x1f6   : > { %869 = shalt.err (!%p866_p1)
}
 0x1f7   : > { %782 = dma.vmem_to_hbm [thread:$0]  (%p996_p4), %s1068_s14, 128, %s1066_s17, %s555_s24  }
 0x1f8 PF: > { %p788_p2 = scmp.ge.s32.totalorder %s920_s23, 2  ;;  %s581_s13 = sand.u32 1, %s900_s18  }
 0x1f9   : > { %s582_s15 = scalar_lea.sflag [#allocation5], %s581_s13 }
 0x1fa   : > { %p785_p3 = pnand %p788_p2, %p1003_p8 }
 0x1fc   : > { %895 = dma.done.wait (!%p785_p3), %s582_s15, 128  }
 0x1fd   : > { %897 = vsyncadd (!%p785_p3), %s582_s15, 4294967168  ;;  %s18_s23 = sadd.s32 1, %s920_s23   ;;  %s1122_s18 = smov %s904_s19 }
 0x1fe   : > { %p15_p5 = scmp.ge.s32.totalorder %s18_s23, 4   ;;  %s1123_s19 = smov %s908_s20 }
 0x1ff   : > { %s1124_s20 = smov %s1009_s6  ;;  %s1125_s21 = smov %s916_s22 }
 0x200   : > { %s1126_s22 = smov %s1128_s26  ;;  %17 = sbr.rel (!%p15_p5) target bundleno = 4 (0x4), region = 101 }
 0x207   :  { %587 = vsyncpa [#allocation5], 1 }
 0x208   :  { %589 = vsyncpa [#allocation5 + $0x1], 1 }

</bundles_post_ra>
